<compile_context>
chip_gen: v5e
topology: v5e:2x2
jax: 0.10.0
libtpu: 0.0.40
codegen_flags: <defaults>
</compile_context>

<pallas_src>
import jax
import jax.numpy as jnp
from jax import lax
from jax.experimental import pallas as pl
from jax.experimental.pallas import tpu as pltpu

KERNEL_SIZE = 25
PAD = (KERNEL_SIZE - 1) // 2


def _round_up(n, m):
    return -(-n // m) * m


# --------------------------------------------------------------------------- #
# Kernel body: one grid step = (one block of Cb channels) x (one batch tile).
# --------------------------------------------------------------------------- #
def dlinear_kernel(x_ref, w_ref, b_ref, o_ref):
    """x_ref: (Cb, Bt, Kp)  activations (channel-major, zero-padded)
       w_ref: (Cb, Kp, Pp)  folded (edge-pad + decomposition + heads) weights
       b_ref: (Cb, 1,  Pp)  summed bias (f32)
       o_ref: (Cb, Bt, Pp)
    """
    out = lax.dot_general(
        x_ref[...], w_ref[...],
        dimension_numbers=(((2,), (1,)), ((0,), (0,))),   # batch over channels
        preferred_element_type=jnp.float32)
    o_ref[...] = (out + b_ref[...]).astype(o_ref.dtype)


# --------------------------------------------------------------------------- #
# One-time parameter preparation (fold decomposition + edge pad into weights).
# --------------------------------------------------------------------------- #
def prepare_dlinear_params(w_seasonal, b_seasonal, w_trend, b_trend, *,
                           matmul_dtype=jnp.bfloat16,
                           max_batch_tile=256,
                           vmem_budget_bytes=12 << 20):
    """Call ONCE per parameter set; the result is reused by every forward call."""
    C, P, L = w_seasonal.shape

    # M[l, j]: coefficient of x[j] in moving_mean[l] (AvgPool1d(25, stride=1)
    # applied to the replicate-padded series). Exact; model stays linear.
    Lp = L + 2 * PAD
    src = jnp.clip(jnp.arange(Lp) - PAD, 0, L - 1)                      # edge gather
    E = (src[:, None] == jnp.arange(L)[None, :]).astype(jnp.float32)    # [Lp, L]
    l = jnp.arange(L)[:, None]
    i = jnp.arange(Lp)[None, :]
    A = ((i >= l) & (i < l + KERNEL_SIZE)).astype(jnp.float32) / KERNEL_SIZE  # [L, Lp]
    M = A @ E                                                           # [L, L]

    ws_t = jnp.transpose(w_seasonal, (0, 2, 1)).astype(jnp.float32)     # [C, L, P]
    wt_t = jnp.transpose(w_trend, (0, 2, 1)).astype(jnp.float32)        # [C, L, P]
    # out_row = x_row @ [ Ws^T + M^T @ (Wt^T - Ws^T) ]
    w_comb = ws_t + jnp.einsum("kl,ckp->clp", M, wt_t - ws_t)           # [C, L, P]
    b_sum = (b_seasonal + b_trend).astype(jnp.float32)                  # [C, P]

    # ---- layout / blocking decisions (exact zero padding everywhere) ----
    itemsize = jnp.dtype(matmul_dtype).itemsize
    sub = 16 if itemsize == 2 else 8                  # sublane packing alignment
    Kp = _round_up(L, 128) if L >= 64 else _round_up(L, sub)
    Pp = _round_up(P, 128) if P >= 64 else P          # don't 16x-inflate tiny P

    # Channel block size from a VMEM budget (double-buffered blocks, worst-case
    # batch tile). Default budget is safe on v5e (16 MiB scoped default) and
    # v7x (64 MiB physical VMEM).
    bt = _round_up(min(max_batch_tile, 256), sub)
    per_chan = 2 * (bt * Kp * itemsize            # x block
                    + Kp * Pp * itemsize          # weight block
                    + Pp * 4                      # bias block
                    + bt * Pp * 4)                # output block (f32)
    Cb = max(1, int(vmem_budget_bytes // per_chan))
    if C >= 2:
        Cb = min(Cb, _round_up(C, 2) // 2)        # >= 2 channel blocks (v7x dual-TC)
    Cb = min(Cb, C)
    Cp = _round_up(C, Cb)

    w_pad = jnp.pad(w_comb, ((0, Cp - C), (0, Kp - L), (0, Pp - P)))
    w_pad = w_pad.astype(matmul_dtype)                                  # [Cp, Kp, Pp]
    b_pad = jnp.pad(b_sum, ((0, Cp - C), (0, Pp - P)))[:, None, :]      # [Cp, 1, Pp]

    return dict(w=w_pad, b=b_pad, C=C, P=P, L=L, Kp=Kp, Pp=Pp, Cb=Cb, Cp=Cp,
                sub=sub, max_batch_tile=bt, matmul_dtype=matmul_dtype)


# --------------------------------------------------------------------------- #
# Forward pass.
# --------------------------------------------------------------------------- #
def dlinear_forward(x, params):
    """x: [B, seq_len, C] -> [B, pred_len, C] (squeezed to [B, pred_len] if C == 1)."""
    B, L, C = x.shape
    assert L == params["L"] and C == params["C"], "shape mismatch vs prepared params"
    P, Kp, Pp = params["P"], params["Kp"], params["Pp"]
    Cb, Cp, sub = params["Cb"], params["Cp"], params["sub"]
    mdt = params["matmul_dtype"]
    out_dtype = x.dtype

    # Batch tiling: nb tiles of Bt sublane-aligned rows.  The weight block is
    # reused across the (innermost) batch axis since its index_map ignores it.
    B_up = _round_up(B, sub)
    nb = -(-B_up // params["max_batch_tile"])
    Bt = _round_up(-(-B_up // nb), sub)
    B_pad = nb * Bt

    x_cbl = jnp.transpose(x, (2, 0, 1)).astype(mdt)                     # [C, B, L]
    x_cbl = jnp.pad(x_cbl, ((0, Cp - C), (0, B_pad - B), (0, Kp - L)))  # [Cp, B_pad, Kp]

    isz = jnp.dtype(mdt).itemsize
    out_isz = jnp.dtype(out_dtype).itemsize
    block_bytes = 2 * Cb * (Bt * Kp * isz + Kp * Pp * isz + Pp * 4 + Bt * Pp * out_isz)
    vmem_limit = int(min(max(block_bytes + (4 << 20), 16 << 20), 64 << 20))

    flops = 2 * Cp * B_pad * Kp * Pp
    bytes_accessed = (x_cbl.size * isz + params["w"].size * isz
                      + params["b"].size * 4 + Cp * B_pad * Pp * out_isz)

    # TODO(synk): if profiling shows exposed weight-DMA latency at moderate Cb,
    # add pipeline_mode=pl.Buffered(3) to the weight BlockSpec.
    out_cbp = pl.pallas_call(
        dlinear_kernel,
        out_shape=jax.ShapeDtypeStruct((Cp, B_pad, Pp), out_dtype),
        grid_spec=pltpu.PrefetchScalarGridSpec(
            num_scalar_prefetch=0,
            grid=(Cp // Cb, B_pad // Bt),      # batch axis innermost -> weight reuse
            in_specs=[
                pl.BlockSpec((Cb, Bt, Kp), lambda c, b: (c, b, 0)),
                pl.BlockSpec((Cb, Kp, Pp), lambda c, b: (c, 0, 0)),
                pl.BlockSpec((Cb, 1, Pp), lambda c, b: (c, 0, 0)),
            ],
            out_specs=pl.BlockSpec((Cb, Bt, Pp), lambda c, b: (c, b, 0)),
        ),
        compiler_params=pltpu.CompilerParams(
            dimension_semantics=("parallel", "parallel"),
            vmem_limit_bytes=vmem_limit),
        cost_estimate=pl.CostEstimate(flops=flops, transcendentals=0,
                                      bytes_accessed=bytes_accessed),
    )(x_cbl, params["w"], params["b"])

    out = out_cbp[:C, :B, :P]               # drop channel / batch / pred padding
    out = jnp.transpose(out, (1, 2, 0))     # [B, P, C]
    if C == 1:
        out = out[..., 0]                   # mimic .squeeze(-1)
    return out


# --------------------------------------------------------------------------- #
# Pure-JAX reference matching the PyTorch forward exactly.
# --------------------------------------------------------------------------- #
def dlinear_reference(x, w_seasonal, b_seasonal, w_trend, b_trend):
    B, L, C = x.shape
    x_pad = jnp.pad(x, ((0, 0), (PAD, PAD), (0, 0)), mode="edge")
    windows = jnp.stack([x_pad[:, k:k + L, :] for k in range(KERNEL_SIZE)], 0)
    moving_mean = windows.mean(0)                      # [B, L, C]
    seasonal = (x - moving_mean).transpose(0, 2, 1)    # [B, C, L]
    trend = moving_mean.transpose(0, 2, 1)             # [B, C, L]
    s_out = jnp.einsum("bcl,cpl->bcp", seasonal, w_seasonal) + b_seasonal[None]
    t_out = jnp.einsum("bcl,cpl->bcp", trend, w_trend) + b_trend[None]
    out = (s_out + t_out).transpose(0, 2, 1)           # [B, P, C]
    if C == 1:
        out = out[..., 0]
    return out


if __name__ == "__main__":
    B, SEQ_LEN, PRED_LEN, CHANNELS = 2, 32, 8, 4

    key = jax.random.PRNGKey(0)
    k_x, k_ws, k_bs, k_wt, k_bt = jax.random.split(key, 5)

    x = jax.random.normal(k_x, (B, SEQ_LEN, CHANNELS), dtype=jnp.float32)

    # Deterministic parameter init (mimics nn.Linear's U(-1/sqrt(in), 1/sqrt(in))).
    bound = 1.0 / (SEQ_LEN ** 0.5)
    w_seasonal = jax.random.uniform(k_ws, (CHANNELS, PRED_LEN, SEQ_LEN),
                                    minval=-bound, maxval=bound, dtype=jnp.float32)
    b_seasonal = jax.random.uniform(k_bs, (CHANNELS, PRED_LEN),
                                    minval=-bound, maxval=bound, dtype=jnp.float32)
    w_trend = jax.random.uniform(k_wt, (CHANNELS, PRED_LEN, SEQ_LEN),
                                 minval=-bound, maxval=bound, dtype=jnp.float32)
    b_trend = jax.random.uniform(k_bt, (CHANNELS, PRED_LEN),
                                 minval=-bound, maxval=bound, dtype=jnp.float32)

    ref = dlinear_reference(x, w_seasonal, b_seasonal, w_trend, b_trend)

    # 1) Exact f32-operand path (tight reference check).
    params_f32 = prepare_dlinear_params(w_seasonal, b_seasonal, w_trend, b_trend,
                                        matmul_dtype=jnp.float32)
    out_f32 = jax.block_until_ready(dlinear_forward(x, params_f32))
    assert out_f32.shape == (B, PRED_LEN, CHANNELS), out_f32.shape
    assert jnp.allclose(out_f32, ref, atol=1e-4, rtol=1e-4), "f32 mismatch vs reference"

    # 2) Default bf16-operand path (perf default; f32 accumulation, looser check).
    params_bf16 = prepare_dlinear_params(w_seasonal, b_seasonal, w_trend, b_trend)
    out_bf16 = jax.block_until_ready(dlinear_forward(x, params_bf16))
    assert out_bf16.shape == (B, PRED_LEN, CHANNELS), out_bf16.shape
    assert jnp.allclose(out_bf16, ref, atol=5e-2, rtol=5e-2), "bf16 mismatch vs reference"

    print("KERNEL_OK")
</pallas_src>

<mosaic_0001>
module attributes {stable_mosaic.version = 11 : i64} {
  func.func @dlinear_kernel(%arg0: i32, %arg1: i32, %arg2: memref<2x8x32xf32, #tpu.memory_space<vmem>>, %arg3: memref<2x32x8xf32, #tpu.memory_space<vmem>>, %arg4: memref<2x1x8xf32, #tpu.memory_space<vmem>>, %arg5: memref<2x8x8xf32, #tpu.memory_space<vmem>>) attributes {dimension_semantics = [#tpu.dimension_semantics<parallel>, #tpu.dimension_semantics<parallel>], iteration_bounds = array<i64: 2, 1>, scalar_prefetch = 0 : i64, scratch_operands = 0 : i64, tpu.core_type = #tpu.core_type<tc>, window_params = [{transform_indices = @transform_0, window_bounds = array<i64: 2, 8, 32>}, {transform_indices = @transform_1, window_bounds = array<i64: 2, 32, 8>}, {transform_indices = @transform_2, window_bounds = array<i64: 2, 1, 8>}, {transform_indices = @transform_3, window_bounds = array<i64: 2, 8, 8>}]} {
    %c0 = arith.constant 0 : index
    %c0_0 = arith.constant 0 : index
    %c0_1 = arith.constant 0 : index
    %0 = vector.load %arg2[%c0, %c0_0, %c0_1] : memref<2x8x32xf32, #tpu.memory_space<vmem>>, vector<2x8x32xf32>
    %c0_2 = arith.constant 0 : index
    %c0_3 = arith.constant 0 : index
    %c0_4 = arith.constant 0 : index
    %1 = vector.load %arg3[%c0_2, %c0_3, %c0_4] : memref<2x32x8xf32, #tpu.memory_space<vmem>>, vector<2x32x8xf32>
    %cst = arith.constant dense<0.000000e+00> : vector<2x8x8xf32>
    %2 = tpu.matmul %0, %1, %cst {dimension_numbers = #tpu.dot_dimension_numbers<[2], [1], [1], [2], [0, 0, 0, 1, 1, 2], [0], [0]>} : vector<2x8x32xf32>, vector<2x32x8xf32>, vector<2x8x8xf32> -> vector<2x8x8xf32>
    %c0_5 = arith.constant 0 : index
    %c0_6 = arith.constant 0 : index
    %c0_7 = arith.constant 0 : index
    %3 = vector.load %arg4[%c0_5, %c0_6, %c0_7] : memref<2x1x8xf32, #tpu.memory_space<vmem>>, vector<2x1x8xf32>
    %4 = vector.broadcast %3 : vector<2x1x8xf32> to vector<2x8x8xf32>
    %5 = arith.addf %2, %4 : vector<2x8x8xf32>
    %c0_8 = arith.constant 0 : index
    %c0_9 = arith.constant 0 : index
    %c0_10 = arith.constant 0 : index
    %6 = vector.load %arg5[%c0_8, %c0_9, %c0_10] : memref<2x8x8xf32, #tpu.memory_space<vmem>>, vector<2x8x8xf32>
    tpu.vector_store %arg5[%c0_8, %c0_9, %c0_10], %5 {strides = array<i32>} : memref<2x8x8xf32, #tpu.memory_space<vmem>>, vector<2x8x8xf32>,
    return
  }
  func.func @transform_0(%arg0: i32, %arg1: i32) -> (i32, i32, i32) {
    %c0_i32 = arith.constant 0 : i32
    %c0_i32_0 = arith.constant 0 : i32
    return %arg0, %arg1, %c0_i32 : i32, i32, i32
  }
  func.func @transform_1(%arg0: i32, %arg1: i32) -> (i32, i32, i32) {
    %c0_i32 = arith.constant 0 : i32
    %c0_i32_0 = arith.constant 0 : i32
    %c0_i32_1 = arith.constant 0 : i32
    return %arg0, %c0_i32, %c0_i32_0 : i32, i32, i32
  }
  func.func @transform_2(%arg0: i32, %arg1: i32) -> (i32, i32, i32) {
    %c0_i32 = arith.constant 0 : i32
    %c0_i32_0 = arith.constant 0 : i32
    %c0_i32_1 = arith.constant 0 : i32
    return %arg0, %c0_i32, %c0_i32_0 : i32, i32, i32
  }
  func.func @transform_3(%arg0: i32, %arg1: i32) -> (i32, i32, i32) {
    %c0_i32 = arith.constant 0 : i32
    %c0_i32_0 = arith.constant 0 : i32
    return %arg0, %arg1, %c0_i32 : i32, i32, i32
  }
}

</mosaic_0001>

<bundles_post_ra>
// kernel: tpu_custom_call.1
= control target key start
LH: loop header
LB: loop body
LE: loop exit
PB: predicated region body
PF: predicated region fallthrough
CT: control target
= control target key end

     0   :  { %8 = vsyncpa [#allocation3], 0  ;;  %s706_s0 = inlined_call_operand.vmem [shape: f32[4,8,32], index: 0, kind: input, shape index: {}]   ;;  %s707_s1 = inlined_call_operand.vmem [shape: f32[4,32,8], index: 1, kind: input, shape index: {}]   ;;  %s708_s2 = inlined_call_operand.vmem [shape: f32[4,1,8], index: 2, kind: input, shape index: {}]   ;;  %s709_s3 = inlined_call_operand.hbm [shape: f32[4,8,8], index: 3, kind: output, shape index: {}]  }
   0x1   :  { %10 = vsyncpa [#allocation3 + $0x1], 0  ;;  %s604_s12 = smov 0   ;;  %s606_s13 = smov 0  }
   0x2   :  { %s608_s14 = smov 0   ;;  %s610_s15 = smov 0  }
   0x3   :  { %s612_s16 = smov 0   ;;  %s614_s17 = smov 0  }
   0x4 LB: > { %s422_s18 = sadd.s32 4294967295, %s580_s17   ;;  %s423_s19 = sadd.s32 4294967294, %s580_s17   ;;  %s580_s17 = sphi %s614_s17, %s16_s17   ;;  %s576_s16 = sphi %s612_s16, %s716_s16   ;;  %s572_s15 = sphi %s610_s15, %s715_s15   ;;  %s568_s14 = sphi %s608_s14, %s714_s14   ;;  %s564_s13 = sphi %s606_s13, %s713_s13   ;;  %s560_s12 = sphi %s604_s12, %s712_s12  }
   0x5   : > { %s28_s20 = sadd.s32 1, %s576_s16  ;;  %s117_s21 = sadd.s32 1, %s568_s14 }
   0x6   : > { %p30_p0 = scmp.ge.s32.totalorder %s28_s20, 2  ;;  %p127_p1 = scmp.ne.s32.totalorder %s568_s14, %s564_s13 }
   0x7   : > { %p128_p2 = scmp.eq.s32.totalorder %s422_s18, 1  ;;  %p133_p3 = scmp.ne.s32.totalorder %s564_s13, %s560_s12 }
   0x8   : > { %s718_s20 = smov (%p30_p0, %s28_s20), 0  ;;  %p134_p5 = scmp.eq.s32.totalorder %s423_s19, 1 }
   0x9   : > { %p644_p4 = por %p128_p2, %p127_p1  ;;  %s112_s23 = ssub.s32 %s576_s16, %s718_s20 }
   0xa   : > { %p426_p6 = scmp.ge.s32.totalorder %s580_s17, 1  ;;  %p115_p7 = scmp.eq.s32.totalorder %s112_s23, 0 }
   0xb   : > { %p651_p8 = por %p134_p5, %p133_p3  ;;  %p182_p9 = scmp.lt.s32.totalorder %s580_s17, 3 }
   0xc   : > { %s657_s25 = scalar_select %p115_p7, %s568_s14, %s117_s21  }
   0xd   : > { %p183_p10 = pnand %p426_p6, %p182_p9 }
   0xe   : > { %s428_s26 = sshll.u32 (!%p183_p10), %s572_s15, 1  ;;  %s216_s11 = sand.u32 (!%p183_p10), 1, %s564_s13  }
   0xf   : > { %186 = sbr.rel (%p183_p10) target bundleno = 164 (0xa4), region = 32  ;;  %p220_p11 = scmp.lt.s32.totalorder (!%p183_p10), %s428_s26, 3 }
  0x10   : > { %s427_s18 = sshll.u32 (!%p183_p10), %s216_s11, 4  ;;  %s442_s19 = sshll.u32 (!%p183_p10), %s572_s15, 4 }
  0x11   : > { %s310_s15 = scalar_lea.sflag (!%p183_p10), [#allocation3], %s216_s11 }
  0x14   : > { %s720_s26 = smov (!%p220_p11, %s428_s26), 3  ;;  %vm259_vm0 = vcmask 261120   ;;  %vm306_vm1 = vcmask 64512  }
  0x15   : > { %s441_s27 = sshll.u32 %s720_s26, 5  ;;  %s429_s4 = sshll.u32 %s720_s26, 3 }
  0x16   : > { %s233_s30 = scalar_lea.vmem %s707_s1, %s441_s27  ;;  %s226_s7 = scalar_lea.vmem %s706_s0, %s429_s4 }
  0x17   : > { %v246_v0 = vld [vmem:[%s233_s30 + $0x18] sm:$0xff]  ;;  %v245_v2 = vld [vmem:[%s233_s30 + $0x10] sm:$0xff]  ;;  %v244_v4 = vld [vmem:[%s233_s30 + $0x8] sm:$0xff]  ;;  %s238_s10 = scalar_lea.vmem %s708_s2, %s720_s26  ;;  %s322_s26 = scalar_lea.hbm %s709_s3, %s442_s19 }
  0x18   : > { %v250_v1 = vld [vmem:[%s233_s30 + $0x38] sm:$0xff]  ;;  %275 = vmatpush.msra.mxu0 %v246_v0  ;;  %v249_v3 = vld [vmem:[%s233_s30 + $0x30] sm:$0xff]  ;;  %v248_v5 = vld [vmem:[%s233_s30 + $0x28] sm:$0xff]  ;;  %s218_s27 = scalar_lea.vmem [#allocation2], %s427_s18  ;;  %s325_s29 = sshll.u32 %s322_s26, 4  ;;  %s326_s29 = int_to_ptr.hbm [resolvable:$true] %s325_s29 }
  0x19   : > { %298 = vmatpush.msra.mxu1 %v250_v1  ;;  %v243_v6 = vld [vmem:[%s233_s30] sm:$0xff]  ;;  %v242_v9 = vld [vmem:[%s226_s7 + $0x8] sm:$0xff]  ;;  %s323_s28 = sshll.u32 %s218_s27, 4  ;;  %s324_s28 = int_to_ptr.vmem [resolvable:$true] %s323_s28 }
  0x1a   : > { %276 = vmatpush.msra.mxu0 %v245_v2  ;;  %v247_v7 = vld [vmem:[%s233_s30 + $0x20] sm:$0xff]  ;;  %s516_s30 = sshra.s32 %s326_s29, 4  ;;  %s517_s30 = int_to_ptr.hbm [resolvable:$true] %s516_s30 }
  0x1b   : > { %299 = vmatpush.msra.mxu1 %v249_v3  ;;  %v241_v8 = vld [vmem:[%s226_s7] sm:$0xff]  ;;  %s518_s4 = scalar_lea.hbm %s517_s30, 16  ;;  %s522_s7 = scalar_lea.hbm %s709_s3, 32 }
  0x1c   : > { %277 = vmatpush.msra.mxu0 %v244_v4  ;;  %v500_v10 = vld [vmem:[%s238_s10] ss:$0 sm:$0xff]  ;;  %v501_v11 = vld [vmem:[%s238_s10 + $0x1] ss:$0 sm:$0xff]  ;;  %p519_p12 = scmp.ne.s32.totalorder %s517_s30, %s518_s4  ;;  %p523_p1 = scmp.lt.s32.totalorder %s517_s30, %s709_s3 }
  0x1d   : > { %300 = vmatpush.msra.mxu1 %v248_v5  ;;  %p524_p2 = scmp.lt.s32.totalorder %s522_s7, %s518_s4 }
  0x1e   : > { %278 = vmatpush.msra.mxu0 %v243_v6  ;;  %p520_p13 = pnand %p519_p12, %p644_p4 }
  0x1f   : > { %301 = vmatpush.msra.mxu1 %v247_v7  ;;  %434 = vmatmul.msk.f32.vlgmr.msra.gmra.mxu0 %vm259_vm0, %v241_v8  ;;  %p525_p3 = por %p524_p2, %p523_p1 }
  0x20   : > { %435 = vmatmul.msk.f32.vlgmr.msra.gmra.mxu1 %vm259_vm0, %v242_v9  ;;  %p521_p0 = pneg %p520_p13 }
  0x22   : > { %p526_p5 = pnand %p525_p3, %p521_p0 }
  0x9c   : > { %v280_v12 = vpop.f32.mrf.mxu0 }
  0x9d   : > { %v303_v13 = vpop.f32.mrf.mxu1  ;;  %v281_v14 = vadd.f32 %v500_v10, %v280_v12 }
  0x9e   : > { %v304_v15 = vadd.f32 %v501_v11, %v303_v13 }
  0x9f   : > { %307 = vst.msk [vmem:[%s218_s27] sm:$0xff] %vm306_vm1, %v281_v14 }
  0xa0   : > { %308 = vst.msk [vmem:[%s218_s27 + $0x8] sm:$0xff] %vm306_vm1, %v304_v15 }
  0xa1   : > { %529 = shalt.err (!%p526_p5)
}
  0xa2   : > { %s582_s10 = smov 128   ;;  %s583_s11 = smov 8  }
  0xa3   : > { %443 = dma.vmem_to_hbm [thread:$0]  (%p644_p4), %s324_s28, 256, %s326_s29, %s310_s15, %s582_s10, %s582_s10, %s583_s11  }
  0xa4 PF: > { %p449_p6 = scmp.ge.s32.totalorder %s580_s17, 2  ;;  %s340_s18 = sand.u32 1, %s560_s12  }
  0xa5   : > { %s341_s19 = scalar_lea.sflag [#allocation3], %s340_s18 }
  0xa6   : > { %p446_p7 = pnand %p449_p6, %p651_p8 }
  0xa8   : > { %p447_p9 = pneg %p446_p7 }
  0xaa   : > { %555 = dma.done.wait (%p447_p9), %s341_s19, 256  }
  0xab   : > { %557 = vsyncadd (%p447_p9), %s341_s19, 4294967040  ;;  %s16_s17 = sadd.s32 1, %s580_s17   ;;  %s712_s12 = smov %s564_s13 }
  0xac   : > { %p13_p10 = scmp.ge.s32.totalorder %s16_s17, 4   ;;  %s713_s13 = smov %s568_s14 }
  0xad   : > { %s714_s14 = smov %s657_s25  ;;  %s715_s15 = smov %s576_s16 }
  0xae   : > { %s716_s16 = smov %s718_s20  ;;  %15 = sbr.rel (!%p13_p10) target bundleno = 4 (0x4), region = 73 }
  0xb3   :  { %347 = vsyncpa [#allocation3], 1 }
  0xb4   :  { %349 = vsyncpa [#allocation3 + $0x1], 1 }

</bundles_post_ra>
